<compile_context>
chip_gen: v7x
topology: tpu7x:2x2x1
jax: 0.10.0
libtpu: 0.0.40
codegen_flags: <defaults>
</compile_context>

<pallas_src>
import functools

import jax
import jax.numpy as jnp
import numpy as np
from jax.experimental import pallas as pl
from jax.experimental.pallas import tpu as pltpu

BP = 8       # padded batch  (one sublane tile)
LANES = 128  # padded output lane width


def _round_up(n, m):
    return (n + m - 1) // m * m


def _rnn_kernel(x_ref, w_ref, o_ref, *, seq_len, in_dim, hid,
                off_wih, off_whh, off_who, off_b):
    """Single-invocation RNN forward.

    x_ref : (seq_len * BP, in_dim) f32  time-major input, batch padded to BP
    w_ref : (rows, 128) f32             packed parameters:
              [off_wih : off_wih+in_dim , :hid]  = W_ih^T
              [off_whh : off_whh+hid    , :hid]  = W_hh^T
              [off_who : off_who+hid    , :   ]  = W_ho^T (lane-padded to 128)
              [off_b                    , :hid]  = b_ih + b_hh (folded)
              [off_b + 1                , :   ]  = b_ho        (lane-padded)
    o_ref : (BP, 128) f32               lane/sublane-padded output
    """
    bp = o_ref.shape[0]

    # --- one-time unpack of the packed parameter buffer (static slices) -----
    wih = w_ref[off_wih:off_wih + in_dim, 0:hid]                        # (D, H)
    whh_bf = w_ref[off_whh:off_whh + hid, 0:hid].astype(jnp.bfloat16)   # (H, H)
    who = w_ref[off_who:off_who + hid, :]                               # (H, 128)
    b_sum = w_ref[off_b:off_b + 1, 0:hid]                               # (1, H)
    b_ho = w_ref[off_b + 1:off_b + 2, :]                                # (1, 128)

    # --- hoisted input projection: one f32 MXU matmul for all time steps ----
    xw = (jnp.dot(x_ref[...], wih, preferred_element_type=jnp.float32)
          + b_sum)                                                      # (S*BP, H)

    # --- fully unrolled recurrence; h stays as a vreg-resident carry ---------
    # Serial-chain matmul uses bf16 operands (single MXU pass) with f32
    # accumulation; add/tanh stay f32 (safe on v5e, exact on v6e/v7x EUP).
    h = jnp.zeros((bp, hid), jnp.float32)
    for t in range(seq_len):
        xw_t = xw[t * bp:(t + 1) * bp, :]              # 8-aligned static slice
        hh = jnp.dot(h.astype(jnp.bfloat16), whh_bf,
                     preferred_element_type=jnp.float32)
        h = jnp.tanh(xw_t + hh)

    # --- output projection, lane-dense (8, 128) store ------------------------
    o_ref[...] = jnp.tanh(
        jnp.dot(h, who, preferred_element_type=jnp.float32) + b_ho)


def pack_params(params):
    """One-time re-layout: transpose weights, fold the two recurrence biases,
    pack everything into a single lane-padded f32 buffer (one parameter DMA)."""
    w_ih, b_ih = params["w_ih"], params["b_ih"]   # (H, D), (H,)
    w_hh, b_hh = params["w_hh"], params["b_hh"]   # (H, H), (H,)
    w_ho, b_ho = params["w_ho"], params["b_ho"]   # (O, H), (O,)
    H, D = w_ih.shape
    O = w_ho.shape[0]
    assert H <= LANES and O <= LANES

    off_wih = 0
    off_whh = _round_up(off_wih + D, BP)
    off_who = _round_up(off_whh + H, BP)
    off_b = _round_up(off_who + H, BP)
    rows = _round_up(off_b + 2, BP)

    w = jnp.zeros((rows, LANES), jnp.float32)
    w = w.at[off_wih:off_wih + D, :H].set(w_ih.T)
    w = w.at[off_whh:off_whh + H, :H].set(w_hh.T)
    w = w.at[off_who:off_who + H, :O].set(w_ho.T)
    w = w.at[off_b, :H].set(b_ih + b_hh)
    w = w.at[off_b + 1, :O].set(b_ho)

    offs = dict(off_wih=off_wih, off_whh=off_whh, off_who=off_who, off_b=off_b)
    dims = dict(in_dim=D, hid=H, out_dim=O)
    return w, offs, dims


def make_forward(params):
    """Returns (jitted forward(x, w_packed), w_packed)."""
    w_packed, offs, dims = pack_params(params)
    hid, out_dim = dims["hid"], dims["out_dim"]

    @jax.jit
    def forward(x, w):
        B, S, D = x.shape
        assert B <= BP, "demo kernel assumes batch <= 8 (one sublane tile)"
        kernel = functools.partial(_rnn_kernel, seq_len=S, in_dim=D, hid=hid,
                                   **offs)
        # Time-major + pad batch to a full sublane tile; fuses under jit with
        # the pallas custom call (no eager relayout dispatches on the hot path).
        x_tm = jnp.transpose(x, (1, 0, 2))                      # (S, B, D)
        x_pad = jnp.pad(x_tm, ((0, 0), (0, BP - B), (0, 0)))    # (S, BP, D)
        x_flat = x_pad.reshape(S * BP, D)

        o_pad = pl.pallas_call(
            kernel,
            out_shape=jax.ShapeDtypeStruct((BP, LANES), jnp.float32),
            in_specs=[pl.BlockSpec(memory_space=pltpu.MemorySpace.VMEM),
                      pl.BlockSpec(memory_space=pltpu.MemorySpace.VMEM)],
            out_specs=pl.BlockSpec(memory_space=pltpu.MemorySpace.VMEM),
        )(x_flat, w)
        return o_pad[:B, :out_dim]

    return forward, w_packed


def init_params(key, input_dim, hidden_dim, output_dim):
    """Deterministic synthetic parameters mirroring BayesLinear mean weights."""
    ks = jax.random.split(key, 6)

    def lin(kw, kb, fan_in, fan_out):
        bound = 1.0 / np.sqrt(fan_in)
        w = jax.random.uniform(kw, (fan_out, fan_in), jnp.float32, -bound, bound)
        b = jax.random.uniform(kb, (fan_out,), jnp.float32, -bound, bound)
        return w, b

    w_ih, b_ih = lin(ks[0], ks[1], input_dim, hidden_dim)
    w_hh, b_hh = lin(ks[2], ks[3], hidden_dim, hidden_dim)
    w_ho, b_ho = lin(ks[4], ks[5], hidden_dim, output_dim)
    llhood_var = jnp.ones((128, 5), jnp.float32)   # unused in forward
    return {"w_ih": w_ih, "b_ih": b_ih,
            "w_hh": w_hh, "b_hh": b_hh,
            "w_ho": w_ho, "b_ho": b_ho,
            "llhood_var": llhood_var}


def reference_forward(x, params):
    """Plain-JAX f32 reference matching the PyTorch forward (non-sampling path)."""
    B, S, D = x.shape
    H = params["w_ih"].shape[0]
    h = jnp.zeros((B, H), jnp.float32)
    for t in range(S):
        x_t = x[:, t, :]
        h = jnp.tanh(x_t @ params["w_ih"].T + params["b_ih"]
                     + h @ params["w_hh"].T + params["b_hh"])
    return jnp.tanh(h @ params["w_ho"].T + params["b_ho"])


if __name__ == "__main__":
    batch, seq, input_dim, hidden_dim, output_dim = 2, 8, 16, 32, 5

    key = jax.random.PRNGKey(0)
    kx, kp = jax.random.split(key)
    x = jax.random.normal(kx, (batch, seq, input_dim), jnp.float32)
    params = init_params(kp, input_dim, hidden_dim, output_dim)

    forward, w_packed = make_forward(params)
    out = forward(x, w_packed)
    out = jax.block_until_ready(out)

    ref = reference_forward(x, params)
    # Tolerance loosened vs the pure-f32 version because the serial h @ W_hh
    # dots use bf16 operands (f32 accumulation) on the MXU, per the review.
    np.testing.assert_allclose(np.asarray(out), np.asarray(ref),
                               rtol=3e-2, atol=3e-2)
    print("KERNEL_OK")
</pallas_src>

<mosaic_0001>
module attributes {stable_mosaic.version = 11 : i64} {
  func.func @_rnn_kernel(%arg0: memref<64x16xf32, #tpu.memory_space<vmem>>, %arg1: memref<88x128xf32, #tpu.memory_space<vmem>>, %arg2: memref<8x128xf32, #tpu.memory_space<vmem>>) attributes {dimension_semantics = [], scalar_prefetch = 0 : i64, scratch_operands = 0 : i64, tpu.core_type = #tpu.core_type<tc>} {
    %c0 = arith.constant 0 : index
    %c0_0 = arith.constant 0 : index
    %0 = vector.load %arg1[%c0, %c0_0] : memref<88x128xf32, #tpu.memory_space<vmem>>, vector<16x32xf32>
    %c16 = arith.constant 16 : index
    %c0_1 = arith.constant 0 : index
    %1 = vector.load %arg1[%c16, %c0_1] : memref<88x128xf32, #tpu.memory_space<vmem>>, vector<32x32xf32>
    %2 = arith.truncf %1 : vector<32x32xf32> to vector<32x32xbf16>
    %c48 = arith.constant 48 : index
    %c0_2 = arith.constant 0 : index
    %3 = vector.load %arg1[%c48, %c0_2] : memref<88x128xf32, #tpu.memory_space<vmem>>, vector<32x128xf32>
    %c80 = arith.constant 80 : index
    %c0_3 = arith.constant 0 : index
    %4 = vector.load %arg1[%c80, %c0_3] : memref<88x128xf32, #tpu.memory_space<vmem>>, vector<1x32xf32>
    %c81 = arith.constant 81 : index
    %c0_4 = arith.constant 0 : index
    %5 = vector.load %arg1[%c81, %c0_4] : memref<88x128xf32, #tpu.memory_space<vmem>>, vector<1x128xf32>
    %c0_5 = arith.constant 0 : index
    %c0_6 = arith.constant 0 : index
    %6 = vector.load %arg0[%c0_5, %c0_6] : memref<64x16xf32, #tpu.memory_space<vmem>>, vector<64x16xf32>
    %cst = arith.constant dense<0.000000e+00> : vector<64x32xf32>
    %7 = tpu.matmul %6, %0, %cst {dimension_numbers = #tpu.dot_dimension_numbers<[1], [0], [0], [1], [0, 0, 1, 1], [], []>} : vector<64x16xf32>, vector<16x32xf32>, vector<64x32xf32> -> vector<64x32xf32>
    %8 = vector.broadcast %4 : vector<1x32xf32> to vector<64x32xf32>
    %9 = arith.addf %7, %8 : vector<64x32xf32>
    %cst_7 = arith.constant 0.000000e+00 : f32
    %10 = vector.broadcast %cst_7 : f32 to vector<8x32xf32>
    %11 = vector.extract_strided_slice %9 {offsets = [0, 0], sizes = [8, 32], strides = [1, 1]} : vector<64x32xf32> to vector<8x32xf32>
    %12 = arith.truncf %10 : vector<8x32xf32> to vector<8x32xbf16>
    %cst_8 = arith.constant dense<0.000000e+00> : vector<8x32xf32>
    %13 = tpu.matmul %12, %2, %cst_8 {dimension_numbers = #tpu.dot_dimension_numbers<[1], [0], [0], [1], [0, 0, 1, 1], [], []>} : vector<8x32xbf16>, vector<32x32xbf16>, vector<8x32xf32> -> vector<8x32xf32>
    %14 = arith.addf %11, %13 : vector<8x32xf32>
    %15 = math.tanh %14 : vector<8x32xf32>
    %16 = vector.extract_strided_slice %9 {offsets = [8, 0], sizes = [8, 32], strides = [1, 1]} : vector<64x32xf32> to vector<8x32xf32>
    %17 = arith.truncf %15 : vector<8x32xf32> to vector<8x32xbf16>
    %cst_9 = arith.constant dense<0.000000e+00> : vector<8x32xf32>
    %18 = tpu.matmul %17, %2, %cst_9 {dimension_numbers = #tpu.dot_dimension_numbers<[1], [0], [0], [1], [0, 0, 1, 1], [], []>} : vector<8x32xbf16>, vector<32x32xbf16>, vector<8x32xf32> -> vector<8x32xf32>
    %19 = arith.addf %16, %18 : vector<8x32xf32>
    %20 = math.tanh %19 : vector<8x32xf32>
    %21 = vector.extract_strided_slice %9 {offsets = [16, 0], sizes = [8, 32], strides = [1, 1]} : vector<64x32xf32> to vector<8x32xf32>
    %22 = arith.truncf %20 : vector<8x32xf32> to vector<8x32xbf16>
    %cst_10 = arith.constant dense<0.000000e+00> : vector<8x32xf32>
    %23 = tpu.matmul %22, %2, %cst_10 {dimension_numbers = #tpu.dot_dimension_numbers<[1], [0], [0], [1], [0, 0, 1, 1], [], []>} : vector<8x32xbf16>, vector<32x32xbf16>, vector<8x32xf32> -> vector<8x32xf32>
    %24 = arith.addf %21, %23 : vector<8x32xf32>
    %25 = math.tanh %24 : vector<8x32xf32>
    %26 = vector.extract_strided_slice %9 {offsets = [24, 0], sizes = [8, 32], strides = [1, 1]} : vector<64x32xf32> to vector<8x32xf32>
    %27 = arith.truncf %25 : vector<8x32xf32> to vector<8x32xbf16>
    %cst_11 = arith.constant dense<0.000000e+00> : vector<8x32xf32>
    %28 = tpu.matmul %27, %2, %cst_11 {dimension_numbers = #tpu.dot_dimension_numbers<[1], [0], [0], [1], [0, 0, 1, 1], [], []>} : vector<8x32xbf16>, vector<32x32xbf16>, vector<8x32xf32> -> vector<8x32xf32>
    %29 = arith.addf %26, %28 : vector<8x32xf32>
    %30 = math.tanh %29 : vector<8x32xf32>
    %31 = vector.extract_strided_slice %9 {offsets = [32, 0], sizes = [8, 32], strides = [1, 1]} : vector<64x32xf32> to vector<8x32xf32>
    %32 = arith.truncf %30 : vector<8x32xf32> to vector<8x32xbf16>
    %cst_12 = arith.constant dense<0.000000e+00> : vector<8x32xf32>
    %33 = tpu.matmul %32, %2, %cst_12 {dimension_numbers = #tpu.dot_dimension_numbers<[1], [0], [0], [1], [0, 0, 1, 1], [], []>} : vector<8x32xbf16>, vector<32x32xbf16>, vector<8x32xf32> -> vector<8x32xf32>
    %34 = arith.addf %31, %33 : vector<8x32xf32>
    %35 = math.tanh %34 : vector<8x32xf32>
    %36 = vector.extract_strided_slice %9 {offsets = [40, 0], sizes = [8, 32], strides = [1, 1]} : vector<64x32xf32> to vector<8x32xf32>
    %37 = arith.truncf %35 : vector<8x32xf32> to vector<8x32xbf16>
    %cst_13 = arith.constant dense<0.000000e+00> : vector<8x32xf32>
    %38 = tpu.matmul %37, %2, %cst_13 {dimension_numbers = #tpu.dot_dimension_numbers<[1], [0], [0], [1], [0, 0, 1, 1], [], []>} : vector<8x32xbf16>, vector<32x32xbf16>, vector<8x32xf32> -> vector<8x32xf32>
    %39 = arith.addf %36, %38 : vector<8x32xf32>
    %40 = math.tanh %39 : vector<8x32xf32>
    %41 = vector.extract_strided_slice %9 {offsets = [48, 0], sizes = [8, 32], strides = [1, 1]} : vector<64x32xf32> to vector<8x32xf32>
    %42 = arith.truncf %40 : vector<8x32xf32> to vector<8x32xbf16>
    %cst_14 = arith.constant dense<0.000000e+00> : vector<8x32xf32>
    %43 = tpu.matmul %42, %2, %cst_14 {dimension_numbers = #tpu.dot_dimension_numbers<[1], [0], [0], [1], [0, 0, 1, 1], [], []>} : vector<8x32xbf16>, vector<32x32xbf16>, vector<8x32xf32> -> vector<8x32xf32>
    %44 = arith.addf %41, %43 : vector<8x32xf32>
    %45 = math.tanh %44 : vector<8x32xf32>
    %46 = vector.extract_strided_slice %9 {offsets = [56, 0], sizes = [8, 32], strides = [1, 1]} : vector<64x32xf32> to vector<8x32xf32>
    %47 = arith.truncf %45 : vector<8x32xf32> to vector<8x32xbf16>
    %cst_15 = arith.constant dense<0.000000e+00> : vector<8x32xf32>
    %48 = tpu.matmul %47, %2, %cst_15 {dimension_numbers = #tpu.dot_dimension_numbers<[1], [0], [0], [1], [0, 0, 1, 1], [], []>} : vector<8x32xbf16>, vector<32x32xbf16>, vector<8x32xf32> -> vector<8x32xf32>
    %49 = arith.addf %46, %48 : vector<8x32xf32>
    %50 = math.tanh %49 : vector<8x32xf32>
    %cst_16 = arith.constant dense<0.000000e+00> : vector<8x128xf32>
    %51 = tpu.matmul %50, %3, %cst_16 {dimension_numbers = #tpu.dot_dimension_numbers<[1], [0], [0], [1], [0, 0, 1, 1], [], []>} : vector<8x32xf32>, vector<32x128xf32>, vector<8x128xf32> -> vector<8x128xf32>
    %52 = vector.broadcast %5 : vector<1x128xf32> to vector<8x128xf32>
    %53 = arith.addf %51, %52 : vector<8x128xf32>
    %54 = math.tanh %53 : vector<8x128xf32>
    %c0_17 = arith.constant 0 : index
    %c0_18 = arith.constant 0 : index
    %55 = vector.load %arg2[%c0_17, %c0_18] : memref<8x128xf32, #tpu.memory_space<vmem>>, vector<8x128xf32>
    tpu.vector_store %arg2[%c0_17, %c0_18], %54 {strides = array<i32>} : memref<8x128xf32, #tpu.memory_space<vmem>>, vector<8x128xf32>,
    return
  }
}

</mosaic_0001>

<bundles_post_ra>
// kernel: forward.1
= control target key start
LH: loop header
LB: loop body
LE: loop exit
PB: predicated region body
PF: predicated region fallthrough
CT: control target
= control target key end

     0   :  { %vm38_vm0 = vcmask 130048   ;;  %v799_v0 = vmov 0.0   ;;  %vm800_vm1 = vmmov 0   ;;  %v801_v12 = vmov 0   ;;  %s964_s1 = inlined_call_operand.vmem [shape: f32[88,128], index: 1, kind: input, shape index: {}]   ;;  %s965_s0 = inlined_call_operand.vmem [shape: f32[64,16], index: 0, kind: input, shape index: {}]   ;;  %s966_s2 = inlined_call_operand.vmem [shape: f32[8,128], index: 2, kind: output, shape index: {}]  }
   0x1   :  { %692 = vmatprep.subr.bf16.mxu1 %v799_v0  ;;  %v12_v1 = vld [vmem:[%s964_s1] sm:$0xff]  ;;  %v13_v2 = vld [vmem:[%s964_s1 + $0x8] sm:$0xff]  ;;  %v14_v3 = vld [vmem:[%s964_s1 + $0x10] sm:$0xff]  ;;  %696 = vmatprep.mubr.msk.bf16.mxu1 %vm800_vm1, %v799_v0  ;;  %vm168_vm2 = vcmask 261120  }
   0x2   :  { %v767_v4 = vpack.c.bf16 %v13_v2, %v12_v1  ;;  %v15_v5 = vld [vmem:[%s964_s1 + $0x18] sm:$0xff]  ;;  %v26_v6 = vld [vmem:[%s965_s0] sm:$0xff]  ;;  %v17_v9 = vld [vmem:[%s964_s1 + $0x28] sm:$0xff] }
   0x3   :  { %v836_v7 = vpack.c.bf16 %v15_v5, %v14_v3  ;;  %680 = vmatprep.mubr.msk.f32.mxu0 %vm38_vm0, %v26_v6  ;;  %v16_v8 = vld [vmem:[%s964_s1 + $0x20] sm:$0xff]  ;;  %v27_v10 = vld [vmem:[%s965_s0 + $0x8] sm:$0xff]  ;;  %v869_v13 = vld [vmem:[%s964_s1 + $0x50] ss:$0 sm:$0xff] }
   0x4   :  { %768 = vmatprep.subr.bf16.mxu0 %v767_v4  ;;  %v849_v11 = vpack.c.bf16 %v17_v9, %v16_v8  ;;  %v28_v24 = vld [vmem:[%s965_s0 + $0x10] sm:$0xff]  ;;  %v29_v25 = vld [vmem:[%s965_s0 + $0x18] sm:$0xff]  ;;  %v30_v26 = vld [vmem:[%s965_s0 + $0x20] sm:$0xff] }
   0x5   :  { %693 = vmatpush3.bf16.msra.mxu1 %v836_v7  ;;  %770 = vmatpush3.bf16.msra.mxu0 %v767_v4  ;;  %v31_v27 = vld [vmem:[%s965_s0 + $0x28] sm:$0xff]  ;;  %v32_v28 = vld [vmem:[%s965_s0 + $0x30] sm:$0xff]  ;;  %v33_v29 = vld [vmem:[%s965_s0 + $0x38] sm:$0xff] }
   0x6   :  { %694 = vmatprep.subr.bf16.mxu1 %v799_v0  ;;  %708 = vmatprep.subr.bf16.mxu0 %v799_v0 }
   0x8   :  { %681 = vmatmul.mubr.msk.f32.vlgmr.msra.gmra.mrb[0].mxu0 %vm38_vm0, %v27_v10 }
   0x9   :  { %695 = vmatpush3.bf16.msra.mxu1 %v849_v11  ;;  %709 = vmatpush3.bf16.msra.mxu0 %v836_v7 }
   0xa   :  { %700 = vmatprep.subr.bf16.mxu1 %v799_v0  ;;  %710 = vmatprep.subr.bf16.mxu0 %v799_v0 }
   0xb   :  { %683 = vmatprep.mubr.msk.f32.mxu0 %vm38_vm0, %v28_v24  ;;  %v802_v24 = vmov 0.0|0.0  }
   0xc   :  { %697 = vmatmul.mubr.bf16.vlgmr.msra.gmra.mrb[0].mxu1 %v801_v12  ;;  %684 = vmatmul.mubr.msk.f32.gmra.mrb[2].mxu0 %vm38_vm0, %v29_v25 }
   0xd   :  { %701 = vmatpush3.bf16.msra.mxu1 %v836_v7  ;;  %704 = vmatprep.mubr.msk.bf16.mxu1 %vm800_vm1, %v799_v0 }
   0xe   :  { %702 = vmatprep.subr.bf16.mxu1 %v799_v0  ;;  %711 = vmatpush3.bf16.msra.mxu0 %v849_v11 }
   0xf   :  { %724 = vmatprep.subr.bf16.mxu0 %v799_v0  ;;  %686 = vmatprep.mubr.msk.f32.mxu0 %vm38_vm0, %v30_v26  ;;  %v23_v26 = vld [vmem:[%s964_s1 + $0x48] sm:$0xff] }
  0x10   :  { %687 = vmatmul.mubr.msk.f32.gmra.mrb[4].mxu0 %vm38_vm0, %v31_v27 }
  0x11   :  { %703 = vmatpush3.bf16.msra.mxu1 %v849_v11  ;;  %689 = vmatprep.mubr.msk.f32.mxu0 %vm38_vm0, %v32_v28 }
  0x12   :  { %716 = vmatprep.subr.bf16.mxu1 %v799_v0 }
  0x14   :  { %690 = vmatmul.mubr.msk.f32.gmra.mrb[6].mxu0 %vm38_vm0, %v33_v29 }
  0x15   :  { %712 = vmatprep.mubr.msk.bf16.mxu0 %vm800_vm1, %v799_v0 }
  0xdb   :  { %v682_v14 = vpop.f32.mrb[0].mxu0 }
  0xdc   :  { %v129_v15 = vpop.f32.mrb[1].mxu0  ;;  %v135_v30 = vadd.f32 %v682_v14, %v869_v13 }
  0xdd   :  { %v130_v16 = vadd.f32 %v869_v13, %v129_v15 }
  0xdf   :  { %v206_v17 = vpop.f32.mrb[0].mxu1  ;;  %v685_v38 = vpop.f32.mrb[2].mxu0 }
  0xe0   :  { %v212_v18 = vadd.f32 %v206_v17, %v130_v16  ;;  %v698_v19 = vpop.f32.mrb[1].mxu1  ;;  %v139_v39 = vpop.f32.mrb[3].mxu0  ;;  %v145_v52 = vadd.f32 %v685_v38, %v869_v13 }
  0xe1   :  { %v209_v20 = vpop.f32.mrb[2].mxu1  ;;  %v140_v44 = vadd.f32 %v869_v13, %v139_v39 }
  0xe2   :  { %781 = vtanh.f32 %v212_v18  ;;  %v699_v21 = vpop.f32.mrb[3].mxu1 }
  0xe3   :  { %v688_v40 = vpop.f32.mrb[4].mxu0 }
  0xe4   :  { %v149_v41 = vpop.f32.mrb[5].mxu0  ;;  %v155_v5 = vadd.f32 %v688_v40, %v869_v13 }
  0xe5   :  { %v150_v60 = vadd.f32 %v869_v13, %v149_v41 }
  0xe7   :  { %v913_v42 = vpop.f32.mrb[6].mxu0 }
  0xe8   :  { %v159_v43 = vpop.f32.mrb[7].mxu0  ;;  %v165_v28 = vadd.f32 %v913_v42, %v869_v13 }
  0xec   :  { %v782_v22 = vpop.eup %781 }
  0xed   :  { %v214_v23 = vpack.c.bf16 %v782_v22, %v782_v22  ;;  %v20_v22 = vld [vmem:[%s964_s1 + $0x30] sm:$0xff] }
  0xef   :  { %705 = vmatmul.mubr.msk.bf16.vlgmr.msra.gmra.mrb[4].mxu1 %vm168_vm2, %v214_v23  ;;  %v22_v23 = vld [vmem:[%s964_s1 + $0x40] sm:$0xff] }
  0xf0   :  { %717 = vmatpush3.bf16.msra.mxu1 %v836_v7  ;;  %720 = vmatprep.mubr.msk.bf16.mxu1 %vm800_vm1, %v799_v0  ;;  %v775_v27 = vpack.c.bf16 %v23_v26, %v22_v23 }
  0xf1   :  { %718 = vmatprep.subr.bf16.mxu1 %v799_v0 }
  0xf4   :  { %719 = vmatpush3.bf16.msra.mxu1 %v849_v11 }
  0xf5   :  { %732 = vmatprep.subr.bf16.mxu1 %v799_v0 }
 0x1c2   :  { %v252_v31 = vpop.f32.mrb[4].mxu1 }
 0x1c3   :  { %v258_v32 = vadd.f32 %v252_v31, %v135_v30  ;;  %v706_v33 = vpop.f32.mrb[5].mxu1 }
 0x1c4   :  { %v255_v34 = vpop.f32.mrb[6].mxu1 }
 0x1c5   :  { %783 = vtanh.f32 %v258_v32  ;;  %v707_v35 = vpop.f32.mrb[7].mxu1 }
 0x1c6   :  { %v635_v35 = vld [vmem:[%s964_s1 + $0x51] ss:$0 sm:$0xff] }
 0x1cf   :  { %v784_v36 = vpop.eup %783 }
 0x1d0   :  { %v260_v37 = vpack.c.bf16 %v784_v36, %v784_v36 }
 0x1d2   :  { %713 = vmatmul.mubr.msk.bf16.vlgmr.msra.gmra.mrb[8].mxu0 %vm168_vm2, %v260_v37 }
 0x1d3   :  { %725 = vmatpush3.bf16.msra.mxu0 %v836_v7  ;;  %728 = vmatprep.mubr.msk.bf16.mxu0 %vm800_vm1, %v799_v0 }
 0x1d4   :  { %726 = vmatprep.subr.bf16.mxu0 %v799_v0 }
 0x1d7   :  { %727 = vmatpush3.bf16.msra.mxu0 %v849_v11 }
 0x1d8   :  { %740 = vmatprep.subr.bf16.mxu0 %v799_v0 }
 0x2a5   :  { %v298_v45 = vpop.f32.mrb[8].mxu0 }
 0x2a6   :  { %v304_v46 = vadd.f32 %v298_v45, %v140_v44  ;;  %v714_v47 = vpop.f32.mrb[9].mxu0 }
 0x2a7   :  { %v301_v48 = vpop.f32.mrb[10].mxu0 }
 0x2a8   :  { %785 = vtanh.f32 %v304_v46  ;;  %v715_v49 = vpop.f32.mrb[11].mxu0 }
 0x2b2   :  { %v786_v50 = vpop.eup %785 }
 0x2b3   :  { %v306_v51 = vpack.c.bf16 %v786_v50, %v786_v50 }
 0x2b5   :  { %721 = vmatmul.mubr.msk.bf16.vlgmr.msra.gmra.mrb[8].mxu1 %vm168_vm2, %v306_v51 }
 0x2b6   :  { %733 = vmatpush3.bf16.msra.mxu1 %v836_v7  ;;  %736 = vmatprep.mubr.msk.bf16.mxu1 %vm800_vm1, %v799_v0 }
 0x2b7   :  { %734 = vmatprep.subr.bf16.mxu1 %v799_v0 }
 0x2ba   :  { %735 = vmatpush3.bf16.msra.mxu1 %v849_v11 }
 0x2bb   :  { %748 = vmatprep.subr.bf16.mxu1 %v799_v0 }
 0x388   :  { %v344_v53 = vpop.f32.mrb[8].mxu1 }
 0x389   :  { %v350_v54 = vadd.f32 %v344_v53, %v145_v52  ;;  %v722_v55 = vpop.f32.mrb[9].mxu1 }
 0x38a   :  { %v347_v56 = vpop.f32.mrb[10].mxu1 }
 0x38b   :  { %787 = vtanh.f32 %v350_v54  ;;  %v723_v57 = vpop.f32.mrb[11].mxu1 }
 0x395   :  { %v788_v58 = vpop.eup %787 }
 0x396   :  { %v352_v59 = vpack.c.bf16 %v788_v58, %v788_v58 }
 0x398   :  { %729 = vmatmul.mubr.msk.bf16.vlgmr.msra.gmra.mrb[12].mxu0 %vm168_vm2, %v352_v59 }
 0x399   :  { %741 = vmatpush3.bf16.msra.mxu0 %v836_v7  ;;  %744 = vmatprep.mubr.msk.bf16.mxu0 %vm800_vm1, %v799_v0 }
 0x39a   :  { %742 = vmatprep.subr.bf16.mxu0 %v799_v0 }
 0x39d   :  { %743 = vmatpush3.bf16.msra.mxu0 %v849_v11 }
 0x39e   :  { %771 = vmatprep.subr.bf16.mxu0 %v802_v24 }
 0x46b   :  { %v390_v61 = vpop.f32.mrb[12].mxu0 }
 0x46c   :  { %v396_v62 = vadd.f32 %v390_v61, %v150_v60  ;;  %v730_v63 = vpop.f32.mrb[13].mxu0 }
 0x46d   :  { %v393_v1 = vpop.f32.mrb[14].mxu0 }
 0x46e   :  { %789 = vtanh.f32 %v396_v62  ;;  %v731_v2 = vpop.f32.mrb[15].mxu0 }
 0x478   :  { %v790_v3 = vpop.eup %789 }
 0x479   :  { %v398_v4 = vpack.c.bf16 %v790_v3, %v790_v3 }
 0x47b   :  { %737 = vmatmul.mubr.msk.bf16.vlgmr.msra.gmra.mrb[12].mxu1 %vm168_vm2, %v398_v4 }
 0x47c   :  { %749 = vmatpush3.bf16.msra.mxu1 %v836_v7  ;;  %752 = vmatprep.mubr.msk.bf16.mxu1 %vm800_vm1, %v799_v0  ;;  %v160_v7 = vadd.f32 %v869_v13, %v159_v43 }
 0x47d   :  { %750 = vmatprep.subr.bf16.mxu1 %v799_v0 }
 0x480   :  { %751 = vmatpush3.bf16.msra.mxu1 %v849_v11 }
 0x54e   :  { %v436_v6 = vpop.f32.mrb[12].mxu1 }
 0x54f   :  { %v442_v8 = vadd.f32 %v436_v6, %v155_v5  ;;  %v738_v9 = vpop.f32.mrb[13].mxu1 }
 0x550   :  { %v439_v10 = vpop.f32.mrb[14].mxu1 }
 0x551   :  { %791 = vtanh.f32 %v442_v8  ;;  %v739_v12 = vpop.f32.mrb[15].mxu1 }
 0x55b   :  { %v792_v14 = vpop.eup %791 }
 0x55c   :  { %v444_v15 = vpack.c.bf16 %v792_v14, %v792_v14 }
 0x55e   :  { %745 = vmatmul.mubr.msk.bf16.vlgmr.msra.gmra.mrb[16].mxu0 %vm168_vm2, %v444_v15 }
 0x55f   :  { %764 = vmatprep.mubr.msk.f32.mxu0 %vm800_vm1, %v799_v0  ;;  %v21_v0 = vld [vmem:[%s964_s1 + $0x38] sm:$0xff] }
 0x560   :  { %v772_v25 = vpack.c.bf16 %v21_v0, %v20_v22 }
 0x562   :  { %773 = vmatpush3.bf16.msra.mxu0 %v772_v25 }
 0x563   :  { %774 = vmatprep.subr.bf16.mxu0 %v802_v24 }
 0x566   :  { %776 = vmatpush3.bf16.msra.mxu0 %v775_v27 }
 0x631   :  { %v482_v16 = vpop.f32.mrb[16].mxu0 }
 0x632   :  { %v488_v17 = vadd.f32 %v482_v16, %v160_v7  ;;  %v746_v11 = vpop.f32.mrb[17].mxu0 }
 0x633   :  { %v485_v18 = vpop.f32.mrb[18].mxu0 }
 0x634   :  { %793 = vtanh.f32 %v488_v17  ;;  %v747_v19 = vpop.f32.mrb[19].mxu0 }
 0x63e   :  { %v794_v20 = vpop.eup %793 }
 0x63f   :  { %v490_v21 = vpack.c.bf16 %v794_v20, %v794_v20 }
 0x641   :  { %753 = vmatmul.mubr.msk.bf16.vlgmr.msra.gmra.mrb[16].mxu1 %vm168_vm2, %v490_v21 }
 0x714   :  { %v528_v29 = vpop.f32.mrb[16].mxu1 }
 0x715   :  { %v534_v30 = vadd.f32 %v528_v29, %v165_v28  ;;  %v754_v31 = vpop.f32.mrb[17].mxu1 }
 0x716   :  { %v531_v32 = vpop.f32.mrb[18].mxu1 }
 0x717   :  { %795 = vtanh.f32 %v534_v30  ;;  %v755_v33 = vpop.f32.mrb[19].mxu1 }
 0x721   :  { %v796_v34 = vpop.eup %795 }
 0x722   :  { %765 = vmatmul.mubr.msk.f32.vlgmr.msra.gmra.mrb[20].mxu0 %vm168_vm2, %v796_v34 }
 0x7f5   :  { %v609_v36 = vpop.f32.mrb[20].mxu0 }
 0x7f6   :  { %v610_v37 = vadd.f32 %v635_v35, %v609_v36  ;;  %v766_v38 = vpop.f32.mrb[21].mxu0 }
 0x7f8   :  { %797 = vtanh.f32 %v610_v37 }
 0x802   :  { %v798_v39 = vpop.eup %797 }
 0x803   :  { %614 = vst [vmem:[%s966_s2] sm:$0xff] %v798_v39 }

</bundles_post_ra>
